<compile_context>
chip_gen: v7x
topology: tpu7x:2x2x1
jax: 0.10.0
libtpu: 0.0.40
codegen_flags: <defaults>
</compile_context>

<pallas_src>
import jax
import jax.numpy as jnp
from jax.experimental import pallas as pl
from jax.experimental.pallas import tpu as pltpu

LEAKY_SLOPE = 0.01          # F.leaky_relu default negative_slope
_SUB, _LANE = 8, 128        # f32 sublane / lane tile


def _rup(n, m):
    return ((n + m - 1) // m) * m


# ----------------------------------------------------------------------------
# Feature probe: single-buffered resident blocks (pl.Buffered(1)).
# Runs one tiny compile the first time; falls back to default double-buffering
# if the runtime rejects it.
# ----------------------------------------------------------------------------
_BUFFERED_ONE = None


def _buffered_one_supported():
    global _BUFFERED_ONE
    if _BUFFERED_ONE is None:
        try:
            def _k(x_ref, o_ref):
                o_ref[...] = x_ref[...]

            spec = pl.BlockSpec((_SUB, _LANE), lambda i: (0, 0),
                                pipeline_mode=pl.Buffered(1))
            fn = pl.pallas_call(
                _k,
                out_shape=jax.ShapeDtypeStruct((_SUB, _LANE), jnp.float32),
                grid=(1,),
                in_specs=[spec],
                out_specs=pl.BlockSpec((_SUB, _LANE), lambda i: (0, 0)),
            )
            jax.block_until_ready(jax.jit(fn)(jnp.zeros((_SUB, _LANE), jnp.float32)))
            _BUFFERED_ONE = True
        except Exception:
            _BUFFERED_ONE = False
    return _BUFFERED_ONE


def _resident_spec(shape):
    """Constant-block-index spec for a VMEM-resident weight (one DMA, stays put)."""
    idx = lambda i: (0,) * len(shape)
    if _buffered_one_supported():
        return pl.BlockSpec(shape, idx, pipeline_mode=pl.Buffered(1))
    return pl.BlockSpec(shape, idx)


# ----------------------------------------------------------------------------
# Kernel
# ----------------------------------------------------------------------------
def _make_kernel(n_hidden, w_offs, w_ks, k_out, compute_dtype):
    """Fused MLP kernel.

    Inputs:
      x_ref   : (TB, in_feat) f32 batch tile
      w_ref   : packed hidden-layer weight slab (rows = transposed, zero-padded W_i)
      b_ref   : (rup(n_hidden,8), LW) f32 hidden biases (row i = bias of layer i)
      wo_ref  : (K, out_feat) fused (last Linear @ theta) weight
      bo_ref  : (1, out_feat) f32 fused bias
      o_ref   : (TB, out_feat) f32 output tile
    """

    def kernel(x_ref, w_ref, b_ref, wo_ref, bo_ref, o_ref):
        h = x_ref[...]
        if h.dtype != jnp.float32:
            h = h.astype(jnp.float32)
        for i in range(n_hidden):                              # static unroll
            off, k = w_offs[i], w_ks[i]
            w = w_ref[off:off + k, :]                          # static slice, resident
            h = jnp.dot(h.astype(compute_dtype), w,            # MXU, f32 accumulate
                        preferred_element_type=jnp.float32)
            h = h + b_ref[i:i + 1, :]                          # bias in f32
            h = jnp.where(h > 0, h, LEAKY_SLOPE * h)           # leaky_relu in f32 (VPU)
        wo = wo_ref[0:k_out, :]
        y = jnp.dot(h.astype(compute_dtype), wo,
                    preferred_element_type=jnp.float32) + bo_ref[...]
        o_ref[...] = y.astype(o_ref.dtype)

    return kernel


# ----------------------------------------------------------------------------
# One-time parameter preparation (transpose, fuse, pad, pack)
# ----------------------------------------------------------------------------
def prepare_params(params, input_features, output_features, weight_dtype=jnp.float32):
    enc = params["encoder"]                              # [(W (out,in), b (out,)), ...]
    theta = jnp.asarray(params["theta"], jnp.float32)    # (out_feat, latent)
    n_lin = len(enc)
    n_hidden = n_lin - 1                                 # layers followed by leaky_relu
    latent = enc[0][0].shape[0]
    in_feat = int(input_features)
    out_feat = int(output_features)
    LW = _rup(latent, _LANE)

    itemsize = jnp.dtype(weight_dtype).itemsize
    row_align = max(_SUB, 32 // itemsize)                # 8 for f32, 16 for bf16 packing
    in_rows = _rup(in_feat, row_align)

    # --- fuse last encoder Linear (no activation) with theta: exact algebra -------
    W_last = jnp.asarray(enc[-1][0], jnp.float32)        # (latent, prev)
    b_last = jnp.asarray(enc[-1][1], jnp.float32)        # (latent,)
    W_out_dense = W_last.T @ theta.T                     # (prev, out_feat)
    b_out = (b_last @ theta.T).reshape(1, out_feat)      # (1, out_feat) f32

    if n_hidden >= 1:
        blocks, offs, ks = [], [], []
        row = 0
        for i in range(n_hidden):
            Wt = jnp.asarray(enc[i][0], jnp.float32).T   # (in_i, out_i)
            rows = in_rows if i == 0 else LW
            blk = jnp.zeros((rows, LW), jnp.float32)
            blk = blk.at[:Wt.shape[0], :Wt.shape[1]].set(Wt)
            blocks.append(blk)
            offs.append(row)
            ks.append(in_feat if i == 0 else LW)
            row += rows
        wslab = jnp.concatenate(blocks, axis=0).astype(weight_dtype)
        bias = jnp.zeros((_rup(n_hidden, _SUB), LW), jnp.float32)
        for i in range(n_hidden):
            b = jnp.asarray(enc[i][1], jnp.float32)
            bias = bias.at[i, :b.shape[0]].set(b)
        k_out, wo_rows = LW, LW
    else:
        # mlp_layers == 0: the single encoder Linear is fully fused with theta.
        # Dummies keep kernel arity fixed (never read).
        wslab = jnp.zeros((row_align, _LANE), weight_dtype)
        bias = jnp.zeros((_SUB, _LANE), jnp.float32)
        offs, ks = [], []
        k_out, wo_rows = in_feat, in_rows

    w_out = jnp.zeros((wo_rows, out_feat), jnp.float32)
    w_out = w_out.at[:W_out_dense.shape[0], :].set(W_out_dense).astype(weight_dtype)

    meta = dict(n_hidden=n_hidden, w_offs=tuple(offs), w_ks=tuple(ks), k_out=k_out,
                in_feat=in_feat, out_feat=out_feat, LW=LW, weight_dtype=weight_dtype)
    return dict(wslab=wslab, bias=bias, w_out=w_out, b_out=b_out, meta=meta)


# ----------------------------------------------------------------------------
# VMEM budgeting / batch-tile policy
# ----------------------------------------------------------------------------
def _vmem_capacity_bytes():
    try:
        return int(pltpu.get_tpu_info().vmem_capacity_bytes)
    except Exception:
        return 64 * 1024 * 1024            # v7x per-core VMEM; conservative everywhere


def _pick_tb(B, tb_cap):
    """Batch tile: multiple of 8 (or the full batch); keep >= 2 grid steps when the
    batch is big enough so v7x megacore can shard the 'parallel' axis across cores."""
    if B <= _SUB:
        return B                           # single tiny tile (block dim == full dim)
    if B < 2 * _LANE:
        return _rup((B + 1) // 2, _SUB)    # two steps, 8-aligned, <= B
    return max(_LANE, min(tb_cap, (B // 2) // _LANE * _LANE))


# ----------------------------------------------------------------------------
# Forward factory (params prepared once; returns a jitted forward(X))
# ----------------------------------------------------------------------------
def make_baseline_net_forward(params, input_features, output_features,
                              weight_dtype=jnp.float32):
    prep = prepare_params(params, input_features, output_features, weight_dtype)
    wslab, bias, w_out, b_out = prep["wslab"], prep["bias"], prep["w_out"], prep["b_out"]
    m = prep["meta"]
    kernel = _make_kernel(m["n_hidden"], m["w_offs"], m["w_ks"], m["k_out"],
                          m["weight_dtype"])
    in_feat, out_feat, LW = m["in_feat"], m["out_feat"], m["LW"]

    # ---- VMEM budget (v7x: 64 MiB physical; v5e/v6e: 16/32 MiB scoped defaults) ----
    vmem_cap = _vmem_capacity_bytes()
    itemsize = jnp.dtype(weight_dtype).itemsize
    n_wbuf = 1 if _buffered_one_supported() else 2
    fixed = n_wbuf * (wslab.size * itemsize + bias.size * 4
                      + w_out.size * itemsize + b_out.size * 4)
    per_row = 4 * (2 * _rup(in_feat, _LANE)        # double-buffered x block
                   + 2 * _rup(out_feat, _LANE)     # double-buffered out block
                   + 3 * LW)                       # live f32 intermediates
    budget = max(int(vmem_cap * 0.5) - fixed, per_row * _LANE)
    tb_cap = max(_LANE, min(1024, (budget // per_row) // _LANE * _LANE))
    vmem_limit = int(min(vmem_cap, 128 * 1024 * 1024) * 0.85)
    # TODO(synk): if `fixed` (weight slab) ever approaches the VMEM budget (huge
    # latent / many layers), switch from a resident slab to an inner
    # pltpu.emit_pipeline over layer chunks instead of shrinking the batch tile.

    w_specs = [_resident_spec(wslab.shape), _resident_spec(bias.shape),
               _resident_spec(w_out.shape), _resident_spec(b_out.shape)]

    @jax.jit
    def forward(X):
        # Same as torch: x = X[:, 0] if X.ndim > 2 else X.  For the common 2-D f32
        # case this is a no-op and X streams straight into the kernel (no wrapper
        # HBM pass); for 3-D inputs it is a single fused slice(+cast) XLA op.
        # TODO(synk): fold the X[:, 0] selection into a 3-D input BlockSpec once a
        # second-minor block dim of 1 is reliably supported by the (8,128) rule.
        x = X[:, 0] if X.ndim > 2 else X
        if x.dtype != jnp.float32:
            x = x.astype(jnp.float32)
        B = x.shape[0]
        TB = _pick_tb(B, tb_cap)
        steps = pl.cdiv(B, TB)         # partial final block handled by Pallas (no pad)

        return pl.pallas_call(
            kernel,
            out_shape=jax.ShapeDtypeStruct((B, out_feat), jnp.float32),
            grid=(steps,),
            in_specs=[pl.BlockSpec((TB, in_feat), lambda i: (i, 0))] + w_specs,
            out_specs=pl.BlockSpec((TB, out_feat), lambda i: (i, 0)),
            compiler_params=pltpu.CompilerParams(
                dimension_semantics=("parallel",),   # batch rows are independent
                vmem_limit_bytes=vmem_limit,
            ),
        )(x, wslab, bias, w_out, b_out)

    return forward


# ----------------------------------------------------------------------------
# Init (torch nn.Linear default init, torch weight layout) + pure-JAX reference
# ----------------------------------------------------------------------------
def init_params(key, input_features, latent_size, output_features, mlp_layers):
    width = input_features if latent_size is None else latent_size
    neurons = [input_features, width] + [width] * mlp_layers

    encoder = []
    for i in range(len(neurons) - 1):
        fan_in, fan_out = neurons[i], neurons[i + 1]
        key, kw, kb = jax.random.split(key, 3)
        bound = 1.0 / jnp.sqrt(fan_in)
        W = jax.random.uniform(kw, (fan_out, fan_in), jnp.float32, -bound, bound)
        b = jax.random.uniform(kb, (fan_out,), jnp.float32, -bound, bound)
        encoder.append((W, b))

    key, kt = jax.random.split(key)
    bound = 1.0 / jnp.sqrt(width)
    W_theta = jax.random.uniform(kt, (output_features, width), jnp.float32,
                                 -bound, bound)
    return {"encoder": encoder, "theta": W_theta}


def reference_forward(X, params):
    """Unfused pure-JAX reference matching the PyTorch module exactly."""
    x = X[:, 0] if X.ndim > 2 else X
    h = x.astype(jnp.float32)
    n = len(params["encoder"])
    for i, (W, b) in enumerate(params["encoder"]):
        h = h @ W.T + b
        if i < n - 1:
            h = jnp.where(h > 0, h, LEAKY_SLOPE * h)
    return h @ params["theta"].T


if __name__ == "__main__":
    key = jax.random.PRNGKey(0)

    input_features = 32
    latent_size = 32
    output_features = 8
    mlp_layers = 2

    key, kp = jax.random.split(key)
    params = init_params(kp, input_features, latent_size, output_features, mlp_layers)

    fwd_f32 = make_baseline_net_forward(params, input_features, output_features)

    # (a) 3-D input (B, T, F): forward uses X[:, 0]; exactness vs reference.
    key, kx = jax.random.split(key)
    X3 = jax.random.normal(kx, (8, 3, input_features), jnp.float32)
    y3 = jax.block_until_ready(fwd_f32(X3))
    ref3 = reference_forward(X3, params)
    assert y3.shape == (8, output_features)
    assert jnp.allclose(y3, ref3, atol=1e-4, rtol=1e-4), "f32 3-D mismatch"

    # (b) larger 2-D batch: exercises 128-row tiles plus a partial final block.
    key, kx = jax.random.split(key)
    X2 = jax.random.normal(kx, (300, input_features), jnp.float32)
    y2 = jax.block_until_ready(fwd_f32(X2))
    ref2 = reference_forward(X2, params)
    assert y2.shape == (300, output_features)
    assert jnp.allclose(y2, ref2, atol=1e-4, rtol=1e-4), "f32 2-D mismatch"

    # (c) bf16-weight path (MXU-friendly on v6e/v7x); f32 accumulate + f32 epilogue.
    fwd_bf16 = make_baseline_net_forward(params, input_features, output_features,
                                         weight_dtype=jnp.bfloat16)
    yb = jax.block_until_ready(fwd_bf16(X3))
    assert yb.shape == (8, output_features)
    assert jnp.allclose(yb, ref3, atol=5e-2, rtol=5e-2), "bf16 mismatch"

    print("KERNEL_OK")
</pallas_src>

<mosaic_0001>
module attributes {stable_mosaic.version = 11 : i64} {
  func.func @_k(%arg0: i32, %arg1: memref<8x128xf32, #tpu.memory_space<vmem>>, %arg2: memref<8x128xf32, #tpu.memory_space<vmem>>) attributes {dimension_semantics = [#tpu.dimension_semantics<arbitrary>], iteration_bounds = array<i64: 1>, scalar_prefetch = 0 : i64, scratch_operands = 0 : i64, tpu.core_type = #tpu.core_type<tc>, window_params = [{pipeline_mode = #tpu.pipeline_mode<synchronous>, transform_indices = @transform_0, window_bounds = array<i64: 8, 128>}, {pipeline_mode = #tpu.pipeline_mode<synchronous>, transform_indices = @transform_1, window_bounds = array<i64: 8, 128>}]} {
    %c0 = arith.constant 0 : index
    %c0_0 = arith.constant 0 : index
    %0 = vector.load %arg1[%c0, %c0_0] : memref<8x128xf32, #tpu.memory_space<vmem>>, vector<8x128xf32>
    %c0_1 = arith.constant 0 : index
    %c0_2 = arith.constant 0 : index
    %1 = vector.load %arg2[%c0_1, %c0_2] : memref<8x128xf32, #tpu.memory_space<vmem>>, vector<8x128xf32>
    tpu.vector_store %arg2[%c0_1, %c0_2], %0 {strides = array<i32>} : memref<8x128xf32, #tpu.memory_space<vmem>>, vector<8x128xf32>,
    return
  }
  func.func @transform_0(%arg0: i32) -> (i32, i32) {
    %c0_i32 = arith.constant 0 : i32
    %c0_i32_0 = arith.constant 0 : i32
    %c0_i32_1 = arith.constant 0 : i32
    return %c0_i32, %c0_i32_0 : i32, i32
  }
  func.func @transform_1(%arg0: i32) -> (i32, i32) {
    %c0_i32 = arith.constant 0 : i32
    %c0_i32_0 = arith.constant 0 : i32
    %c0_i32_1 = arith.constant 0 : i32
    return %c0_i32, %c0_i32_0 : i32, i32
  }
}

module attributes {stable_mosaic.version = 11 : i64} {
  func.func @kernel(%arg0: i32, %arg1: memref<8x32xf32, #tpu.memory_space<vmem>>, %arg2: memref<160x128xf32, #tpu.memory_space<vmem>>, %arg3: memref<8x128xf32, #tpu.memory_space<vmem>>, %arg4: memref<128x8xf32, #tpu.memory_space<vmem>>, %arg5: memref<1x8xf32, #tpu.memory_space<vmem>>, %arg6: memref<8x8xf32, #tpu.memory_space<vmem>>) attributes {dimension_semantics = [#tpu.dimension_semantics<parallel>], iteration_bounds = array<i64: 1>, scalar_prefetch = 0 : i64, scratch_operands = 0 : i64, tpu.core_type = #tpu.core_type<tc>, window_params = [{transform_indices = @transform_0, window_bounds = array<i64: 8, 32>}, {pipeline_mode = #tpu.pipeline_mode<synchronous>, transform_indices = @transform_1, window_bounds = array<i64: 160, 128>}, {pipeline_mode = #tpu.pipeline_mode<synchronous>, transform_indices = @transform_2, window_bounds = array<i64: 8, 128>}, {pipeline_mode = #tpu.pipeline_mode<synchronous>, transform_indices = @transform_3, window_bounds = array<i64: 128, 8>}, {pipeline_mode = #tpu.pipeline_mode<synchronous>, transform_indices = @transform_4, window_bounds = array<i64: 1, 8>}, {transform_indices = @transform_5, window_bounds = array<i64: 8, 8>}]} {
    %c0 = arith.constant 0 : index
    %c0_0 = arith.constant 0 : index
    %0 = vector.load %arg1[%c0, %c0_0] : memref<8x32xf32, #tpu.memory_space<vmem>>, vector<8x32xf32>
    %c0_1 = arith.constant 0 : index
    %c0_2 = arith.constant 0 : index
    %1 = vector.load %arg2[%c0_1, %c0_2] : memref<160x128xf32, #tpu.memory_space<vmem>>, vector<32x128xf32>
    %cst = arith.constant dense<0.000000e+00> : vector<8x128xf32>
    %2 = tpu.matmul %0, %1, %cst {dimension_numbers = #tpu.dot_dimension_numbers<[1], [0], [0], [1], [0, 0, 1, 1], [], []>} : vector<8x32xf32>, vector<32x128xf32>, vector<8x128xf32> -> vector<8x128xf32>
    %c0_3 = arith.constant 0 : index
    %c0_4 = arith.constant 0 : index
    %3 = vector.load %arg3[%c0_3, %c0_4] : memref<8x128xf32, #tpu.memory_space<vmem>>, vector<1x128xf32>
    %4 = vector.broadcast %3 : vector<1x128xf32> to vector<8x128xf32>
    %5 = arith.addf %2, %4 : vector<8x128xf32>
    %cst_5 = arith.constant 0.000000e+00 : f32
    %6 = vector.broadcast %cst_5 : f32 to vector<8x128xf32>
    %7 = arith.cmpf ogt, %5, %6 : vector<8x128xf32>
    %cst_6 = arith.constant 0.00999999977 : f32
    %8 = vector.broadcast %cst_6 : f32 to vector<8x128xf32>
    %9 = arith.mulf %8, %5 : vector<8x128xf32>
    %10 = arith.select %7, %5, %9 : vector<8x128xi1>, vector<8x128xf32>
    %c32 = arith.constant 32 : index
    %c0_7 = arith.constant 0 : index
    %11 = vector.load %arg2[%c32, %c0_7] : memref<160x128xf32, #tpu.memory_space<vmem>>, vector<128x128xf32>
    %cst_8 = arith.constant dense<0.000000e+00> : vector<8x128xf32>
    %12 = tpu.matmul %10, %11, %cst_8 {dimension_numbers = #tpu.dot_dimension_numbers<[1], [0], [0], [1], [0, 0, 1, 1], [], []>} : vector<8x128xf32>, vector<128x128xf32>, vector<8x128xf32> -> vector<8x128xf32>
    %c1 = arith.constant 1 : index
    %c0_9 = arith.constant 0 : index
    %13 = vector.load %arg3[%c1, %c0_9] : memref<8x128xf32, #tpu.memory_space<vmem>>, vector<1x128xf32>
    %14 = vector.broadcast %13 : vector<1x128xf32> to vector<8x128xf32>
    %15 = arith.addf %12, %14 : vector<8x128xf32>
    %cst_10 = arith.constant 0.000000e+00 : f32
    %16 = vector.broadcast %cst_10 : f32 to vector<8x128xf32>
    %17 = arith.cmpf ogt, %15, %16 : vector<8x128xf32>
    %cst_11 = arith.constant 0.00999999977 : f32
    %18 = vector.broadcast %cst_11 : f32 to vector<8x128xf32>
    %19 = arith.mulf %18, %15 : vector<8x128xf32>
    %20 = arith.select %17, %15, %19 : vector<8x128xi1>, vector<8x128xf32>
    %c0_12 = arith.constant 0 : index
    %c0_13 = arith.constant 0 : index
    %21 = vector.load %arg4[%c0_12, %c0_13] : memref<128x8xf32, #tpu.memory_space<vmem>>, vector<128x8xf32>
    %cst_14 = arith.constant dense<0.000000e+00> : vector<8x8xf32>
    %22 = tpu.matmul %20, %21, %cst_14 {dimension_numbers = #tpu.dot_dimension_numbers<[1], [0], [0], [1], [0, 0, 1, 1], [], []>} : vector<8x128xf32>, vector<128x8xf32>, vector<8x8xf32> -> vector<8x8xf32>
    %c0_15 = arith.constant 0 : index
    %c0_16 = arith.constant 0 : index
    %23 = vector.load %arg5[%c0_15, %c0_16] : memref<1x8xf32, #tpu.memory_space<vmem>>, vector<1x8xf32>
    %24 = vector.broadcast %23 : vector<1x8xf32> to vector<8x8xf32>
    %25 = arith.addf %22, %24 : vector<8x8xf32>
    %c0_17 = arith.constant 0 : index
    %c0_18 = arith.constant 0 : index
    %26 = vector.load %arg6[%c0_17, %c0_18] : memref<8x8xf32, #tpu.memory_space<vmem>>, vector<8x8xf32>
    tpu.vector_store %arg6[%c0_17, %c0_18], %25 {strides = array<i32>} : memref<8x8xf32, #tpu.memory_space<vmem>>, vector<8x8xf32>,
    return
  }
  func.func @transform_0(%arg0: i32) -> (i32, i32) {
    %c0_i32 = arith.constant 0 : i32
    %c0_i32_0 = arith.constant 0 : i32
    return %arg0, %c0_i32 : i32, i32
  }
  func.func @transform_1(%arg0: i32) -> (i32, i32) {
    %c0_i32 = arith.constant 0 : i32
    %c0_i32_0 = arith.constant 0 : i32
    %c0_i32_1 = arith.constant 0 : i32
    return %c0_i32, %c0_i32_0 : i32, i32
  }
  func.func @transform_2(%arg0: i32) -> (i32, i32) {
    %c0_i32 = arith.constant 0 : i32
    %c0_i32_0 = arith.constant 0 : i32
    %c0_i32_1 = arith.constant 0 : i32
    return %c0_i32, %c0_i32_0 : i32, i32
  }
  func.func @transform_3(%arg0: i32) -> (i32, i32) {
    %c0_i32 = arith.constant 0 : i32
    %c0_i32_0 = arith.constant 0 : i32
    %c0_i32_1 = arith.constant 0 : i32
    return %c0_i32, %c0_i32_0 : i32, i32
  }
  func.func @transform_4(%arg0: i32) -> (i32, i32) {
    %c0_i32 = arith.constant 0 : i32
    %c0_i32_0 = arith.constant 0 : i32
    %c0_i32_1 = arith.constant 0 : i32
    return %c0_i32, %c0_i32_0 : i32, i32
  }
  func.func @transform_5(%arg0: i32) -> (i32, i32) {
    %c0_i32 = arith.constant 0 : i32
    %c0_i32_0 = arith.constant 0 : i32
    return %arg0, %c0_i32 : i32, i32
  }
}

</mosaic_0001>

<bundles_post_ra>
// kernel: tpu_custom_call.1
= control target key start
LH: loop header
LB: loop body
LE: loop exit
PB: predicated region body
PF: predicated region fallthrough
CT: control target
= control target key end

     0   :  { %6 = vsyncpa [#allocation3], 0  ;;  %s124_s0 = inlined_call_operand.hbm [shape: f32[8,128], index: 0, kind: input, shape index: {}]   ;;  %s125_s1 = inlined_call_operand.hbm [shape: f32[8,128], index: 1, kind: output, shape index: {}]  }
   0x1   :  { %7 = vsyncpa [#allocation4], 0  ;;  %s88_s6 = smov [#allocation2]   ;;  %s40_s10 = scalar_lea.hbm %s124_s0, 128 }
   0x2   :  { %s14_s7 = sshll.u32 %s88_s6, 4  ;;  %p41_p0 = scmp.ne.s32.totalorder %s124_s0, %s40_s10  ;;  %s15_s7 = int_to_ptr.vmem [resolvable:$true] %s14_s7 }
   0x3   :  { %p44_p1 = scmp.lt.u32.totalorder %s40_s10, %s124_s0 }
   0x5   :  { %p46_p2 = pnand %p44_p1, %p41_p0 }
   0x7   :  { %49 = shalt.err (!%p46_p2)
}
   0x8   :  { %s50_s15 = scalar_lea.vmem %s15_s7, 128  ;;  %p55_p4 = scmp.lt.s32.totalorder %s15_s7, %s15_s7 }
   0x9   :  { %p51_p3 = scmp.ne.s32.totalorder %s15_s7, %s50_s15  ;;  %p56_p5 = scmp.lt.s32.totalorder %s50_s15, %s50_s15 }
   0xb   :  { %p57_p6 = por %p56_p5, %p55_p4 }
   0xd   :  { %p58_p7 = pnand %p57_p6, %p51_p3 }
   0xf   :  { %61 = shalt.err (!%p58_p7)
}
  0x10   :  { %17 = dma.hbm_to_vmem [thread:$0]  %s124_s0, 128, %s15_s7, [#allocation3]  }
  0x11   :  { %84 = dma.done.wait [#allocation3], 128  }
  0x12   :  { %85 = vsyncadd [#allocation3], 4294967168  ;;  %s89_s18 = smov [#allocation5]   ;;  %v21_v0 = vld [vmem:[#allocation2] sm:$0xff] }
  0x13   :  { %s29_s19 = sshll.u32 %s89_s18, 4  ;;  %22 = vst [vmem:[#allocation5] sm:$0xff] %v21_v0  ;;  %s30_s19 = int_to_ptr.vmem [resolvable:$true] %s29_s19 }
  0x14   :  { %s62_s20 = scalar_lea.vmem %s30_s19, 128  ;;  %p67_p9 = scmp.lt.s32.totalorder %s30_s19, %s30_s19 }
  0x15   :  { %p63_p8 = scmp.ne.s32.totalorder %s30_s19, %s62_s20  ;;  %p68_p10 = scmp.lt.s32.totalorder %s62_s20, %s62_s20 }
  0x17   :  { %p69_p11 = por %p68_p10, %p67_p9 }
  0x19   :  { %p70_p12 = pnand %p69_p11, %p63_p8 }
  0x1b   :  { %73 = shalt.err (!%p70_p12)
}
  0x1c   :  { %s74_s23 = scalar_lea.hbm %s125_s1, 128 }
  0x1d   :  { %p75_p13 = scmp.ne.s32.totalorder %s125_s1, %s74_s23  ;;  %p78_p0 = scmp.lt.u32.totalorder %s74_s23, %s125_s1 }
  0x1f   :  { %p80_p1 = pnand %p78_p0, %p75_p13 }
  0x21   :  { %83 = shalt.err (!%p80_p1)
}
  0x22   :  { %32 = dma.vmem_to_hbm [thread:$0]  %s30_s19, 128, %s125_s1, [#allocation4]  }
  0x23   :  { %86 = dma.done.wait [#allocation4], 128  }
  0x24   :  { %87 = vsyncadd [#allocation4], 4294967168 }
  0x25   :  { %36 = vsyncpa [#allocation3], 1 }
  0x26   :  { %37 = vsyncpa [#allocation4], 1 }

// kernel: forward.1
= control target key start
LH: loop header
LB: loop body
LE: loop exit
PB: predicated region body
PF: predicated region fallthrough
CT: control target
= control target key end

     0   :  { %10 = vsyncpa [#allocation3], 0  ;;  %s706_s0 = inlined_call_operand.vmem [shape: f32[8,32], index: 0, kind: input, shape index: {}]   ;;  %s707_s1 = inlined_call_operand.hbm [shape: f32[160,128], index: 1, kind: input, shape index: {}]   ;;  %s708_s2 = inlined_call_operand.vmem [shape: f32[8,128], index: 2, kind: input, shape index: {}]   ;;  %s709_s3 = inlined_call_operand.hbm [shape: f32[128,8], index: 3, kind: input, shape index: {}]   ;;  %s710_s4 = inlined_call_operand.vmem [shape: f32[1,8], index: 4, kind: input, shape index: {}]   ;;  %s711_s5 = inlined_call_operand.hbm [shape: f32[8,8], index: 5, kind: output, shape index: {}]  }
   0x1   :  { %11 = vsyncpa [#allocation6], 0 }
   0x2   :  { %12 = vsyncpa [#allocation4], 0  ;;  %s599_s18 = smov [#allocation2]   ;;  %s527_s22 = scalar_lea.hbm %s707_s1, 2560 }
   0x3   :  { %s20_s19 = sshll.u32 %s599_s18, 4  ;;  %p528_p0 = scmp.ne.s32.totalorder %s707_s1, %s527_s22  ;;  %s21_s19 = int_to_ptr.vmem [resolvable:$true] %s20_s19 }
   0x4   :  { %p531_p1 = scmp.lt.u32.totalorder %s527_s22, %s707_s1 }
   0x6   :  { %p533_p2 = pnand %p531_p1, %p528_p0 }
   0x8   :  { %536 = shalt.err (!%p533_p2)
}
   0x9   :  { %s537_s27 = scalar_lea.vmem %s21_s19, 2560  ;;  %p542_p4 = scmp.lt.s32.totalorder %s21_s19, %s21_s19 }
   0xa   :  { %p538_p3 = scmp.ne.s32.totalorder %s21_s19, %s537_s27  ;;  %p543_p5 = scmp.lt.s32.totalorder %s537_s27, %s537_s27 }
   0xc   :  { %p544_p6 = por %p543_p5, %p542_p4 }
   0xe   :  { %p545_p7 = pnand %p544_p6, %p538_p3 }
  0x10   :  { %548 = shalt.err (!%p545_p7)
}
  0x11   :  { %s600_s28 = smov 128   ;;  %s601_s29 = smov 8  }
  0x12   :  { %26 = dma.hbm_to_vmem [thread:$0]  %s707_s1, 2560, %s21_s19, [#allocation3], %s600_s28, %s600_s28, %s601_s29  }
  0x13   :  { %s602_s7 = smov [#allocation5]   ;;  %s549_s11 = scalar_lea.hbm %s709_s3, 2048 }
  0x14   :  { %s34_s8 = sshll.u32 %s602_s7, 4  ;;  %p550_p8 = scmp.ne.s32.totalorder %s709_s3, %s549_s11  ;;  %s35_s8 = int_to_ptr.vmem [resolvable:$true] %s34_s8 }
  0x15   :  { %p553_p9 = scmp.lt.u32.totalorder %s549_s11, %s709_s3 }
  0x17   :  { %p555_p10 = pnand %p553_p9, %p550_p8 }
  0x19   :  { %558 = shalt.err (!%p555_p10)
}
  0x1a   :  { %s559_s16 = scalar_lea.vmem %s35_s8, 2048  ;;  %p564_p12 = scmp.lt.s32.totalorder %s35_s8, %s35_s8 }
  0x1b   :  { %p560_p11 = scmp.ne.s32.totalorder %s35_s8, %s559_s16  ;;  %p565_p13 = scmp.lt.s32.totalorder %s559_s16, %s559_s16 }
  0x1d   :  { %p566_p0 = por %p565_p13, %p564_p12 }
  0x1f   :  { %p567_p1 = pnand %p566_p0, %p560_p11 }
  0x21   :  { %570 = shalt.err (!%p567_p1)
}
  0x22   :  { %40 = dma.hbm_to_vmem [thread:$0]  %s709_s3, 2048, %s35_s8, [#allocation6], %s600_s28, %s600_s28, %s601_s29  }
  0x23   :  { %593 = dma.done.wait [#allocation3], 2560  }
  0x24   :  { %594 = vsyncadd [#allocation3], 4294964736 }
  0x25   :  { %595 = dma.done.wait [#allocation6], 2048  }
  0x26   :  { %596 = vsyncadd [#allocation6], 4294965248  ;;  %v603_v0 = vmov 0.0|0.0   ;;  %vm604_vm0 = vmmov 0   ;;  %v605_v1 = vmov 0.0   ;;  %v50_v2 = vld [vmem:[#allocation2] sm:$0xff] }
  0x27   :  { %465 = vmatprep.subr.bf16.mxu0 %v603_v0  ;;  %392 = vmatprep.mubr.msk.f32.mxu0 %vm604_vm0, %v605_v1  ;;  %v51_v3 = vld [vmem:[#allocation2 + $0x8] sm:$0xff]  ;;  %v52_v4 = vld [vmem:[#allocation2 + $0x10] sm:$0xff]  ;;  %v53_v6 = vld [vmem:[#allocation2 + $0x18] sm:$0xff]  ;;  %vm59_vm1 = vcmask 261120   ;;  %s606_s24 = smov [#allocation7]   ;;  %vm323_vm4 = vcmask 64512  }
  0x28   :  { %471 = vmatprep.subr.bf16.mxu1 %v603_v0  ;;  %427 = vmatprep.mubr.msk.f32.mxu1 %vm604_vm0, %v605_v1  ;;  %v466_v5 = vpack.c.bf16 %v51_v3, %v50_v2  ;;  %v136_v7 = vld [vmem:[#allocation2 + $0x20] sm:$0xff]  ;;  %v137_v8 = vld [vmem:[#allocation2 + $0x28] sm:$0xff]  ;;  %v138_v9 = vld [vmem:[#allocation2 + $0x30] sm:$0xff]  ;;  %v469_v11 = vpack.c.bf16 %v53_v6, %v52_v4  ;;  %s331_s25 = sshll.u32 %s606_s24, 4  ;;  %s332_s25 = int_to_ptr.vmem [resolvable:$true] %s331_s25 }
  0x29   :  { %v139_v10 = vld [vmem:[#allocation2 + $0x38] sm:$0xff]  ;;  %v472_v12 = vpack.c.bf16 %v137_v8, %v136_v7  ;;  %v140_v14 = vld [vmem:[#allocation2 + $0x40] sm:$0xff]  ;;  %v141_v15 = vld [vmem:[#allocation2 + $0x48] sm:$0xff]  ;;  %p576_p3 = scmp.lt.s32.totalorder %s332_s25, %s332_s25 }
  0x2a   :  { %467 = vmatpush3.bf16.msra.mxu0 %v466_v5  ;;  %v475_v13 = vpack.c.bf16 %v139_v10, %v138_v9  ;;  %v49_v16 = vld [vmem:[%s706_s0] sm:$0xff]  ;;  %v478_v17 = vpack.c.bf16 %v141_v15, %v140_v14  ;;  %v142_v18 = vld [vmem:[#allocation2 + $0x50] sm:$0xff]  ;;  %v143_v19 = vld [vmem:[#allocation2 + $0x58] sm:$0xff] }
  0x2b   :  { %468 = vmatprep.subr.bf16.mxu0 %v603_v0  ;;  %473 = vmatpush3.bf16.msra.mxu1 %v472_v12  ;;  %v481_v20 = vpack.c.bf16 %v143_v19, %v142_v18  ;;  %v144_v21 = vld [vmem:[#allocation2 + $0x60] sm:$0xff]  ;;  %v145_v22 = vld [vmem:[#allocation2 + $0x68] sm:$0xff]  ;;  %v146_v24 = vld [vmem:[#allocation2 + $0x70] sm:$0xff] }
  0x2c   :  { %474 = vmatprep.subr.bf16.mxu1 %v603_v0  ;;  %v484_v23 = vpack.c.bf16 %v145_v22, %v144_v21  ;;  %v147_v25 = vld [vmem:[#allocation2 + $0x78] sm:$0xff]  ;;  %v148_v27 = vld [vmem:[#allocation2 + $0x80] sm:$0xff]  ;;  %v149_v28 = vld [vmem:[#allocation2 + $0x88] sm:$0xff] }
  0x2d   :  { %v487_v26 = vpack.c.bf16 %v147_v25, %v146_v24  ;;  %v490_v29 = vpack.c.bf16 %v149_v28, %v148_v27  ;;  %v150_v30 = vld [vmem:[#allocation2 + $0x90] sm:$0xff]  ;;  %v151_v31 = vld [vmem:[#allocation2 + $0x98] sm:$0xff]  ;;  %v230_v33 = vld [vmem:[#allocation5] sm:$0xff] }
  0x2e   :  { %470 = vmatpush3.bf16.msra.mxu0 %v469_v11  ;;  %v493_v32 = vpack.c.bf16 %v151_v31, %v150_v30  ;;  %v231_v34 = vld [vmem:[#allocation5 + $0x8] sm:$0xff]  ;;  %v232_v35 = vld [vmem:[#allocation5 + $0x10] sm:$0xff]  ;;  %v233_v37 = vld [vmem:[#allocation5 + $0x18] sm:$0xff] }
  0x2f   :  { %495 = vmatprep.subr.bf16.mxu0 %v603_v0  ;;  %476 = vmatpush3.bf16.msra.mxu1 %v475_v13  ;;  %v496_v36 = vpack.c.bf16 %v231_v34, %v230_v33  ;;  %v499_v38 = vpack.c.bf16 %v233_v37, %v232_v35  ;;  %v234_v39 = vld [vmem:[#allocation5 + $0x20] sm:$0xff]  ;;  %v235_v40 = vld [vmem:[#allocation5 + $0x28] sm:$0xff]  ;;  %v236_v42 = vld [vmem:[#allocation5 + $0x30] sm:$0xff] }
  0x30   :  { %477 = vmatprep.subr.bf16.mxu1 %v603_v0  ;;  %v502_v41 = vpack.c.bf16 %v235_v40, %v234_v39  ;;  %v237_v43 = vld [vmem:[#allocation5 + $0x38] sm:$0xff]  ;;  %v238_v45 = vld [vmem:[#allocation5 + $0x40] sm:$0xff]  ;;  %v239_v46 = vld [vmem:[#allocation5 + $0x48] sm:$0xff] }
  0x31   :  { %393 = vmatmul.mubr.msk.f32.vlgmr.msra.gmra.mrb[0].mxu0 %vm59_vm1, %v49_v16  ;;  %v505_v44 = vpack.c.bf16 %v237_v43, %v236_v42  ;;  %v508_v47 = vpack.c.bf16 %v239_v46, %v238_v45  ;;  %v240_v48 = vld [vmem:[#allocation5 + $0x50] sm:$0xff]  ;;  %v241_v49 = vld [vmem:[#allocation5 + $0x58] sm:$0xff]  ;;  %v242_v51 = vld [vmem:[#allocation5 + $0x60] sm:$0xff] }
  0x32   :  { %462 = vmatprep.mubr.msk.f32.mxu0 %vm604_vm0, %v605_v1  ;;  %497 = vmatpush3.bf16.msra.mxu0 %v496_v36  ;;  %v511_v50 = vpack.c.bf16 %v241_v49, %v240_v48  ;;  %v243_v52 = vld [vmem:[#allocation5 + $0x68] sm:$0xff]  ;;  %v341_v54 = vld [vmem:[%s708_s2] ss:$0 sm:$0xff]  ;;  %v244_v60 = vld [vmem:[#allocation5 + $0x70] sm:$0xff] }
  0x33   :  { %479 = vmatpush3.bf16.msra.mxu1 %v478_v17  ;;  %498 = vmatprep.subr.bf16.mxu0 %v603_v0  ;;  %v514_v53 = vpack.c.bf16 %v243_v52, %v242_v51  ;;  %v245_v61 = vld [vmem:[#allocation5 + $0x78] sm:$0xff]  ;;  %v343_v63 = vld [vmem:[%s708_s2 + $0x1] ss:$0 sm:$0xff]  ;;  %v344_v5 = vld [vmem:[%s710_s4] ss:$0 sm:$0xff]  ;;  %s571_s2 = scalar_lea.vmem %s332_s25, 128 }
  0x34   :  { %480 = vmatprep.subr.bf16.mxu1 %v603_v0  ;;  %v517_v62 = vpack.c.bf16 %v245_v61, %v244_v60  ;;  %p572_p2 = scmp.ne.s32.totalorder %s332_s25, %s571_s2  ;;  %p577_p4 = scmp.lt.s32.totalorder %s571_s2, %s571_s2 }
  0x36   :  { %500 = vmatpush3.bf16.msra.mxu0 %v499_v38  ;;  %p578_p5 = por %p577_p4, %p576_p3 }
  0x37   :  { %482 = vmatpush3.bf16.msra.mxu1 %v481_v20  ;;  %501 = vmatprep.subr.bf16.mxu0 %v603_v0 }
  0x38   :  { %483 = vmatprep.subr.bf16.mxu1 %v603_v0  ;;  %p579_p6 = pnand %p578_p5, %p572_p2 }
  0x3a   :  { %503 = vmatpush3.bf16.msra.mxu0 %v502_v41 }
  0x3b   :  { %485 = vmatpush3.bf16.msra.mxu1 %v484_v23  ;;  %504 = vmatprep.subr.bf16.mxu0 %v603_v0 }
  0x3c   :  { %486 = vmatprep.subr.bf16.mxu1 %v603_v0 }
  0x3e   :  { %506 = vmatpush3.bf16.msra.mxu0 %v505_v44 }
  0x3f   :  { %488 = vmatpush3.bf16.msra.mxu1 %v487_v26  ;;  %507 = vmatprep.subr.bf16.mxu0 %v603_v0 }
  0x40   :  { %489 = vmatprep.subr.bf16.mxu1 %v603_v0 }
  0x42   :  { %509 = vmatpush3.bf16.msra.mxu0 %v508_v47 }
  0x43   :  { %491 = vmatpush3.bf16.msra.mxu1 %v490_v29  ;;  %510 = vmatprep.subr.bf16.mxu0 %v603_v0 }
  0x44   :  { %492 = vmatprep.subr.bf16.mxu1 %v603_v0 }
  0x46   :  { %512 = vmatpush3.bf16.msra.mxu0 %v511_v50 }
  0x47   :  { %494 = vmatpush3.bf16.msra.mxu1 %v493_v32  ;;  %513 = vmatprep.subr.bf16.mxu0 %v603_v0 }
  0x4a   :  { %515 = vmatpush3.bf16.msra.mxu0 %v514_v53 }
  0x4b   :  { %516 = vmatprep.subr.bf16.mxu0 %v603_v0 }
  0x4e   :  { %518 = vmatpush3.bf16.msra.mxu0 %v517_v62 }
 0x104   :  { %v129_v55 = vpop.f32.mrb[0].mxu0 }
 0x105   :  { %v130_v56 = vadd.f32 %v341_v54, %v129_v55  ;;  %v394_v57 = vpop.f32.mrb[1].mxu0 }
 0x107   :  { %v134_v58 = vmul.f32 0.01, %v130_v56  ;;  %vm133_vm2 = vcmp.gt.f32.partialorder %v130_v56, 0.0 }
 0x109   :  { %v135_v59 = vsel %vm133_vm2, %v130_v56, %v134_v58 }
 0x10a   :  { %428 = vmatmul.mubr.f32.vlgmr.msra.gmra.mrb[0].mxu1 %v135_v59 }
 0x1dd   :  { %v223_v0 = vpop.f32.mrb[0].mxu1 }
 0x1de   :  { %v224_v1 = vadd.f32 %v343_v63, %v223_v0  ;;  %v429_v2 = vpop.f32.mrb[1].mxu1 }
 0x1e0   :  { %vm227_vm3 = vcmp.gt.f32.partialorder %v224_v1, 0.0  ;;  %v228_v3 = vmul.f32 0.01, %v224_v1 }
 0x1e2   :  { %v229_v4 = vsel %vm227_vm3, %v224_v1, %v228_v3 }
 0x1e3   :  { %463 = vmatmul.mubr.f32.vlgmr.msra.gmra.mrb[2].mxu0 %v229_v4 }
 0x2b6   :  { %v319_v6 = vpop.f32.mrb[2].mxu0 }
 0x2b7   :  { %v320_v7 = vadd.f32 %v344_v5, %v319_v6  ;;  %v464_v8 = vpop.f32.mrb[3].mxu0 }
 0x2b9   :  { %324 = vst.msk [vmem:[#allocation7] sm:$0xff] %vm323_vm4, %v320_v7 }
 0x2ba   :  { %582 = shalt.err (!%p579_p6)
}
 0x2bb   :  { %s583_s28 = scalar_lea.hbm %s711_s5, 128 }
 0x2bc   :  { %p584_p7 = scmp.ne.s32.totalorder %s711_s5, %s583_s28  ;;  %p587_p8 = scmp.lt.u32.totalorder %s583_s28, %s711_s5 }
 0x2be   :  { %p589_p9 = pnand %p587_p8, %p584_p7 }
 0x2c0   :  { %592 = shalt.err (!%p589_p9)
}
 0x2c1   :  { %334 = dma.vmem_to_hbm [thread:$0]  %s332_s25, 128, %s711_s5, [#allocation4]  }
 0x2c2   :  { %597 = dma.done.wait [#allocation4], 128  }
 0x2c3   :  { %598 = vsyncadd [#allocation4], 4294967168 }
 0x2c4   :  { %338 = vsyncpa [#allocation3], 1 }
 0x2c5   :  { %339 = vsyncpa [#allocation6], 1 }
 0x2c6   :  { %340 = vsyncpa [#allocation4], 1 }

</bundles_post_ra>
